<compile_context>
chip_gen: v5e
topology: v5e:2x2
jax: 0.10.0
libtpu: 0.0.40
codegen_flags: <defaults>
</compile_context>

<pallas_src>
import jax
import jax.numpy as jnp
from jax.experimental import pallas as pl
from jax.experimental.pallas import tpu as pltpu


def head_kernel(x_ref, gamma_ref, beta_ref, w_ref, b1_ref, w2_ref, sel_ref,
                bias_ref, out_ref):
    """One grid step processes TB batch rows.

    x_ref     : (TB, S, H)  last_hidden_state tile (f32 or bf16)
    gamma/beta: (1, H) f32  LayerNorm affine
    w_ref     : (H, F+1)    [w1 | mean_m(wmd)]   (f32 or bf16 MXU operands)
    b1_ref    : (1, F+1) f32  [b1 | 0]
    w2_ref    : (1, F+1) f32  [w2 | 0]   (b2 omitted: softmax shift invariance)
    sel_ref   : (1, F+1) f32  one-hot selector of the folded wmd column
    bias_ref  : (1,) SMEM   mean_m(bmd)  -- final output bias
    out_ref   : (TB, 1) f32
    """
    TB, S, H = x_ref.shape

    # ---- LayerNorm over H (f32 math even when x streams in bf16) -----------
    # (TB,S,H)->(TB*S,H) is a pure sublane merge when S % 8 == 0 (pad S
    # upstream otherwise, or the reshape materialises a relayout copy).
    xf = x_ref[...].astype(jnp.float32).reshape(TB * S, H)
    mean = jnp.mean(xf, axis=-1, keepdims=True)
    xm = xf - mean
    var = jnp.mean(xm * xm, axis=-1, keepdims=True)
    rs = jax.lax.rsqrt(var + 1e-5)
    # affine + (optional bf16) cast in one expression; xln_c is the only
    # consumer of the normalised activations, so it can die after the matmul.
    xln_c = ((xm * rs) * gamma_ref[...] + beta_ref[...]).astype(w_ref.dtype)

    # ---- fused MXU matmul: attention hidden AND folded MultiDropout proj ---
    #   hf[..., :F] = xln @ w1          (attention first linear)
    #   hf[...,  F] = xln @ mean(wmd)   (per-token MultiDropout projection)
    hf = jnp.dot(xln_c, w_ref[...], preferred_element_type=jnp.float32)
    hf = hf.reshape(TB, S, -1)                                   # (TB, S, F+1)

    t = jnp.tanh(hf + b1_ref[...])                               # EUP
    scores = jnp.sum(t * w2_ref[...], axis=-1)                   # (TB, S)
    proj = jnp.sum(hf * sel_ref[...], axis=-1)                   # (TB, S)

    # ---- softmax-weighted pooling; normalisation deferred past the reduce --
    m = jnp.max(scores, axis=-1, keepdims=True)
    e = jnp.exp(scores - m)                                      # (TB, S)
    denom = jnp.sum(e, axis=-1, keepdims=True)                   # (TB, 1)
    num = jnp.sum(e * proj, axis=-1, keepdims=True)              # (TB, 1)
    out = num / denom + bias_ref[0]        # exact divide: only TB elements
    out_ref[...] = out.astype(out_ref.dtype)                     # (TB, 1)


def base_model_head(last_hidden_state, params, *, tb=None,
                    compute_dtype=jnp.bfloat16):
    """Pallas head. `last_hidden_state` may be f32 or bf16; for realistic
    (HBM-bound) shapes stream it in bf16 and let the kernel upcast per tile."""
    x = last_hidden_state
    B, S, H = x.shape
    F = params["w1"].shape[1]

    # ---- batch tile (rows per grid step) ------------------------------------
    # * B <= 8 : single step over the full batch (out block == full dims).
    # * B  > 8 : multiple of 8 (sublane-aligned (tb,1) out blocks), capped so
    #   there are >= 2 grid steps (both v7x TensorCores get work) and the
    #   double-buffered x tile stays within a conservative per-buffer budget
    #   (v5e scoped default is 16 MiB; v7x physical VMEM is 64 MiB; the f32
    #   LN / h intermediates roughly double the x-tile footprint again).
    # Ragged last block (B % tb != 0) is handled by Pallas' masked edge blocks
    # -- no wrapper-side padding copy of x.
    if tb is None:
        if B <= 8:
            tb = B
        else:
            itemsize = jnp.dtype(x.dtype).itemsize
            budget = 8 * 1024 * 1024                # bytes per x pipeline buffer
            fit = max(1, budget // (S * H * itemsize))
            tb = max(8, min(64, (fit // 8) * 8, ((B // 2) // 8) * 8))
            # For huge S*H, keep TB*S a multiple of 256 when possible (MXU fill
            # on v6e/v7x); if even tb=8 blows VMEM, stream x in bf16 upstream.
    grid = pl.cdiv(B, tb)

    # ---- fold the head's linear algebra (exact, eval-mode dropout) ---------
    #   mean_m(p @ wmd[:,m] + bmd[m]) == p @ mean_m(wmd) + mean_m(bmd)
    #   b2 is added to the softmax logits -> a no-op (shift invariance).
    f32 = jnp.float32
    wmd_mean = jnp.mean(params["wmd"].astype(f32), axis=1, keepdims=True)  # (H,1)
    w_aug = jnp.concatenate([params["w1"].astype(f32), wmd_mean], axis=1)  # (H,F+1)
    w_aug = w_aug.astype(compute_dtype)
    zero1 = jnp.zeros((1, 1), f32)
    b1_aug = jnp.concatenate([params["b1"].astype(f32), zero1], axis=1)    # (1,F+1)
    w2_aug = jnp.concatenate([params["w2"].astype(f32), zero1], axis=1)    # (1,F+1)
    sel = jnp.concatenate([jnp.zeros((1, F), f32), jnp.ones((1, 1), f32)], axis=1)
    bias = jnp.mean(params["bmd"]).reshape(1).astype(f32)                  # (1,)
    Fa = F + 1

    # NOTE: constant-index weight blocks are double-buffered by default; for
    # very large (H,F) consider single-buffering them (pl.Buffered) or loading
    # once into scratch to free VMEM for a deeper x pipeline.
    fixed = lambda shape: pl.BlockSpec(shape, lambda i: (0,) * len(shape))
    grid_spec = pltpu.PrefetchScalarGridSpec(
        num_scalar_prefetch=0,
        grid=(grid,),
        in_specs=[
            pl.BlockSpec((tb, S, H), lambda i: (i, 0, 0)),  # x tile (per step)
            fixed((1, H)),     # gamma
            fixed((1, H)),     # beta
            fixed((H, Fa)),    # [w1 | mean(wmd)]
            fixed((1, Fa)),    # [b1 | 0]
            fixed((1, Fa)),    # [w2 | 0]
            fixed((1, Fa)),    # proj-column selector
            pl.BlockSpec(memory_space=pltpu.MemorySpace.SMEM),  # bias (1,)
        ],
        out_specs=pl.BlockSpec((tb, 1), lambda i: (i, 0)),
    )
    out = pl.pallas_call(
        head_kernel,
        out_shape=jax.ShapeDtypeStruct((B, 1), jnp.float32),
        grid_spec=grid_spec,
        compiler_params=pltpu.CompilerParams(
            dimension_semantics=("parallel",),       # batch steps independent
            # > v5e's 16 MiB scoped default, comfortably < v7x's 64 MiB physical.
            vmem_limit_bytes=40 * 1024 * 1024,
        ),
    )(x, params["gamma"], params["beta"], w_aug, b1_aug, w2_aug, sel, bias)
    return out


def init_params(key, hidden_size, hidden_features, multi_dropout_num):
    """Deterministic parameter init mirroring the PyTorch module shapes."""
    H, F, M = hidden_size, hidden_features, multi_dropout_num
    ks = jax.random.split(key, 6)
    u = lambda k, shape, fan_in: jax.random.uniform(
        k, shape, jnp.float32, -1.0 / jnp.sqrt(fan_in), 1.0 / jnp.sqrt(fan_in))
    return {
        # LayerNorm(hidden_size)
        "gamma": jnp.ones((1, H), jnp.float32),
        "beta": jnp.zeros((1, H), jnp.float32),
        # Attention: Linear(H -> F), Tanh, Linear(F -> 1), Softmax(dim=1)
        "w1": u(ks[0], (H, F), H),
        "b1": u(ks[1], (1, F), H),
        "w2": u(ks[2], (1, F), F),
        "b2": u(ks[3], (1, 1), F),   # unused by the kernel (softmax shift inv.)
        # MultiDropout: M x Linear(H -> 1), bias init constant -1.0
        "wmd": u(ks[4], (H, M), H),
        "bmd": jnp.full((1, M), -1.0, jnp.float32),
    }


def head_reference(x, p):
    """Plain-JAX f32 reference of the head (eval-mode dropout)."""
    mean = jnp.mean(x, -1, keepdims=True)
    var = jnp.mean(jnp.square(x - mean), -1, keepdims=True)
    xln = (x - mean) / jnp.sqrt(var + 1e-5) * p["gamma"][0] + p["beta"][0]
    h = jnp.tanh(jnp.einsum("bsh,hf->bsf", xln, p["w1"]) + p["b1"][0])
    scores = jnp.einsum("bsf,f->bs", h, p["w2"][0])[..., None] + p["b2"][0, 0]
    attn = jax.nn.softmax(scores, axis=1)
    pooled = jnp.sum(attn * xln, axis=1)                   # (B, H)
    preds = pooled @ p["wmd"] + p["bmd"][0]                # (B, M)
    return jnp.mean(preds, axis=-1, keepdims=True)         # (B, 1)


if __name__ == "__main__":
    H, F, M = 32, 16, 5                   # hidden_size, hidden_features, heads
    key = jax.random.PRNGKey(0)
    k_x1, k_x2, k_p = jax.random.split(key, 3)
    params = init_params(k_p, H, F, M)

    # --- tiny batch: f32 x, f32 MXU operands (tight check, single grid step) --
    B1, S1 = 2, 8
    x1 = jax.random.normal(k_x1, (B1, S1, H), jnp.float32)   # last_hidden_state
    ref1 = head_reference(x1, params)
    out1 = jax.block_until_ready(
        base_model_head(x1, params, compute_dtype=jnp.float32))
    assert out1.shape == (B1, 1)
    assert jnp.allclose(out1, ref1, rtol=5e-3, atol=5e-3), (out1, ref1)

    # --- larger batch: bf16-streamed x + bf16 MXU operands, multi-step grid ---
    B2, S2 = 16, 8
    x2 = jax.random.normal(k_x2, (B2, S2, H), jnp.float32)
    ref2 = head_reference(x2, params)
    out2 = jax.block_until_ready(
        base_model_head(x2.astype(jnp.bfloat16), params,
                        compute_dtype=jnp.bfloat16))
    assert out2.shape == (B2, 1)
    assert jnp.allclose(out2, ref2, rtol=5e-2, atol=5e-2), (out2, ref2)

    print("KERNEL_OK")
</pallas_src>

<mosaic_0001>
module attributes {stable_mosaic.version = 11 : i64} {
  func.func @head_kernel(%arg0: i32, %arg1: memref<2x8x32xf32, #tpu.memory_space<vmem>>, %arg2: memref<1x32xf32, #tpu.memory_space<vmem>>, %arg3: memref<1x32xf32, #tpu.memory_space<vmem>>, %arg4: memref<32x17xf32, #tpu.memory_space<vmem>>, %arg5: memref<1x17xf32, #tpu.memory_space<vmem>>, %arg6: memref<1x17xf32, #tpu.memory_space<vmem>>, %arg7: memref<1x17xf32, #tpu.memory_space<vmem>>, %arg8: memref<1xf32, #tpu.memory_space<smem>>, %arg9: memref<2x1xf32, #tpu.memory_space<vmem>>) attributes {dimension_semantics = [#tpu.dimension_semantics<parallel>], iteration_bounds = array<i64: 1>, scalar_prefetch = 0 : i64, scratch_operands = 0 : i64, tpu.core_type = #tpu.core_type<tc>, window_params = [{transform_indices = @transform_0, window_bounds = array<i64: 2, 8, 32>}, {pipeline_mode = #tpu.pipeline_mode<synchronous>, transform_indices = @transform_1, window_bounds = array<i64: 1, 32>}, {pipeline_mode = #tpu.pipeline_mode<synchronous>, transform_indices = @transform_2, window_bounds = array<i64: 1, 32>}, {pipeline_mode = #tpu.pipeline_mode<synchronous>, transform_indices = @transform_3, window_bounds = array<i64: 32, 17>}, {pipeline_mode = #tpu.pipeline_mode<synchronous>, transform_indices = @transform_4, window_bounds = array<i64: 1, 17>}, {pipeline_mode = #tpu.pipeline_mode<synchronous>, transform_indices = @transform_5, window_bounds = array<i64: 1, 17>}, {pipeline_mode = #tpu.pipeline_mode<synchronous>, transform_indices = @transform_6, window_bounds = array<i64: 1, 17>}, {transform_indices = @transform_7, window_bounds = array<i64: 1>}, {transform_indices = @transform_8, window_bounds = array<i64: 2, 1>}]} {
    %c0 = arith.constant 0 : index
    %c0_0 = arith.constant 0 : index
    %c0_1 = arith.constant 0 : index
    %0 = vector.load %arg1[%c0, %c0_0, %c0_1] : memref<2x8x32xf32, #tpu.memory_space<vmem>>, vector<2x8x32xf32>
    %1 = vector.shape_cast %0 : vector<2x8x32xf32> to vector<16x32xf32>
    %cst = arith.constant dense<0.000000e+00> : vector<16xf32>
    %2 = vector.multi_reduction <add>, %1, %cst [1] : vector<16x32xf32> to vector<16xf32>
    %3 = vector.shape_cast %2 : vector<16xf32> to vector<16x1xf32>
    %cst_2 = arith.constant 3.200000e+01 : f32
    %4 = vector.broadcast %cst_2 : f32 to vector<16x1xf32>
    %5 = arith.divf %3, %4 : vector<16x1xf32>
    %6 = vector.broadcast %5 : vector<16x1xf32> to vector<16x32xf32>
    %7 = arith.subf %1, %6 : vector<16x32xf32>
    %8 = arith.mulf %7, %7 : vector<16x32xf32>
    %cst_3 = arith.constant dense<0.000000e+00> : vector<16xf32>
    %9 = vector.multi_reduction <add>, %8, %cst_3 [1] : vector<16x32xf32> to vector<16xf32>
    %10 = vector.shape_cast %9 : vector<16xf32> to vector<16x1xf32>
    %cst_4 = arith.constant 3.200000e+01 : f32
    %11 = vector.broadcast %cst_4 : f32 to vector<16x1xf32>
    %12 = arith.divf %10, %11 : vector<16x1xf32>
    %cst_5 = arith.constant 9.99999974E-6 : f32
    %13 = vector.broadcast %cst_5 : f32 to vector<16x1xf32>
    %14 = arith.addf %12, %13 : vector<16x1xf32>
    %15 = math.rsqrt %14 : vector<16x1xf32>
    %16 = vector.broadcast %15 : vector<16x1xf32> to vector<16x32xf32>
    %17 = arith.mulf %7, %16 : vector<16x32xf32>
    %c0_6 = arith.constant 0 : index
    %c0_7 = arith.constant 0 : index
    %18 = vector.load %arg2[%c0_6, %c0_7] : memref<1x32xf32, #tpu.memory_space<vmem>>, vector<1x32xf32>
    %19 = vector.broadcast %18 : vector<1x32xf32> to vector<16x32xf32>
    %20 = arith.mulf %17, %19 : vector<16x32xf32>
    %c0_8 = arith.constant 0 : index
    %c0_9 = arith.constant 0 : index
    %21 = vector.load %arg3[%c0_8, %c0_9] : memref<1x32xf32, #tpu.memory_space<vmem>>, vector<1x32xf32>
    %22 = vector.broadcast %21 : vector<1x32xf32> to vector<16x32xf32>
    %23 = arith.addf %20, %22 : vector<16x32xf32>
    %c0_10 = arith.constant 0 : index
    %c0_11 = arith.constant 0 : index
    %24 = vector.load %arg4[%c0_10, %c0_11] : memref<32x17xf32, #tpu.memory_space<vmem>>, vector<32x17xf32>
    %cst_12 = arith.constant dense<0.000000e+00> : vector<16x17xf32>
    %25 = tpu.matmul %23, %24, %cst_12 {dimension_numbers = #tpu.dot_dimension_numbers<[1], [0], [0], [1], [0, 0, 1, 1], [], []>} : vector<16x32xf32>, vector<32x17xf32>, vector<16x17xf32> -> vector<16x17xf32>
    %26 = vector.shape_cast %25 : vector<16x17xf32> to vector<2x8x17xf32>
    %c0_13 = arith.constant 0 : index
    %c0_14 = arith.constant 0 : index
    %27 = vector.load %arg5[%c0_13, %c0_14] : memref<1x17xf32, #tpu.memory_space<vmem>>, vector<1x17xf32>
    %28 = vector.shape_cast %27 : vector<1x17xf32> to vector<1x1x17xf32>
    %29 = vector.broadcast %28 : vector<1x1x17xf32> to vector<2x8x17xf32>
    %30 = arith.addf %26, %29 : vector<2x8x17xf32>
    %31 = math.tanh %30 : vector<2x8x17xf32>
    %c0_15 = arith.constant 0 : index
    %c0_16 = arith.constant 0 : index
    %32 = vector.load %arg6[%c0_15, %c0_16] : memref<1x17xf32, #tpu.memory_space<vmem>>, vector<1x17xf32>
    %33 = vector.shape_cast %32 : vector<1x17xf32> to vector<1x1x17xf32>
    %34 = vector.broadcast %33 : vector<1x1x17xf32> to vector<2x8x17xf32>
    %35 = arith.mulf %31, %34 : vector<2x8x17xf32>
    %cst_17 = arith.constant dense<0.000000e+00> : vector<2x8xf32>
    %36 = vector.multi_reduction <add>, %35, %cst_17 [2] : vector<2x8x17xf32> to vector<2x8xf32>
    %c0_18 = arith.constant 0 : index
    %c0_19 = arith.constant 0 : index
    %37 = vector.load %arg7[%c0_18, %c0_19] : memref<1x17xf32, #tpu.memory_space<vmem>>, vector<1x17xf32>
    %38 = vector.shape_cast %37 : vector<1x17xf32> to vector<1x1x17xf32>
    %39 = vector.broadcast %38 : vector<1x1x17xf32> to vector<2x8x17xf32>
    %40 = arith.mulf %26, %39 : vector<2x8x17xf32>
    %cst_20 = arith.constant dense<0.000000e+00> : vector<2x8xf32>
    %41 = vector.multi_reduction <add>, %40, %cst_20 [2] : vector<2x8x17xf32> to vector<2x8xf32>
    %cst_21 = arith.constant dense<0xFF800000> : vector<2xf32>
    %42 = vector.multi_reduction <maximumf>, %36, %cst_21 [1] : vector<2x8xf32> to vector<2xf32>
    %43 = vector.shape_cast %42 : vector<2xf32> to vector<2x1xf32>
    %44 = vector.broadcast %43 : vector<2x1xf32> to vector<2x8xf32>
    %45 = arith.subf %36, %44 : vector<2x8xf32>
    %46 = math.exp %45 : vector<2x8xf32>
    %cst_22 = arith.constant dense<0.000000e+00> : vector<2xf32>
    %47 = vector.multi_reduction <add>, %46, %cst_22 [1] : vector<2x8xf32> to vector<2xf32>
    %48 = vector.shape_cast %47 : vector<2xf32> to vector<2x1xf32>
    %49 = arith.mulf %46, %41 : vector<2x8xf32>
    %cst_23 = arith.constant dense<0.000000e+00> : vector<2xf32>
    %50 = vector.multi_reduction <add>, %49, %cst_23 [1] : vector<2x8xf32> to vector<2xf32>
    %51 = vector.shape_cast %50 : vector<2xf32> to vector<2x1xf32>
    %52 = arith.divf %51, %48 : vector<2x1xf32>
    %c0_24 = arith.constant 0 : index
    %53 = memref.load %arg8[%c0_24] : memref<1xf32, #tpu.memory_space<smem>>
    %54 = vector.broadcast %53 : f32 to vector<2x1xf32>
    %55 = arith.addf %52, %54 : vector<2x1xf32>
    %c0_25 = arith.constant 0 : index
    %c0_26 = arith.constant 0 : index
    %56 = vector.load %arg9[%c0_25, %c0_26] : memref<2x1xf32, #tpu.memory_space<vmem>>, vector<2x1xf32>
    tpu.vector_store %arg9[%c0_25, %c0_26], %55 {strides = array<i32>} : memref<2x1xf32, #tpu.memory_space<vmem>>, vector<2x1xf32>,
    return
  }
  func.func @transform_0(%arg0: i32) -> (i32, i32, i32) {
    %c0_i32 = arith.constant 0 : i32
    %c0_i32_0 = arith.constant 0 : i32
    %c0_i32_1 = arith.constant 0 : i32
    return %arg0, %c0_i32, %c0_i32_0 : i32, i32, i32
  }
  func.func @transform_1(%arg0: i32) -> (i32, i32) {
    %c0_i32 = arith.constant 0 : i32
    %c0_i32_0 = arith.constant 0 : i32
    %c0_i32_1 = arith.constant 0 : i32
    return %c0_i32, %c0_i32_0 : i32, i32
  }
  func.func @transform_2(%arg0: i32) -> (i32, i32) {
    %c0_i32 = arith.constant 0 : i32
    %c0_i32_0 = arith.constant 0 : i32
    %c0_i32_1 = arith.constant 0 : i32
    return %c0_i32, %c0_i32_0 : i32, i32
  }
  func.func @transform_3(%arg0: i32) -> (i32, i32) {
    %c0_i32 = arith.constant 0 : i32
    %c0_i32_0 = arith.constant 0 : i32
    %c0_i32_1 = arith.constant 0 : i32
    return %c0_i32, %c0_i32_0 : i32, i32
  }
  func.func @transform_4(%arg0: i32) -> (i32, i32) {
    %c0_i32 = arith.constant 0 : i32
    %c0_i32_0 = arith.constant 0 : i32
    %c0_i32_1 = arith.constant 0 : i32
    return %c0_i32, %c0_i32_0 : i32, i32
  }
  func.func @transform_5(%arg0: i32) -> (i32, i32) {
    %c0_i32 = arith.constant 0 : i32
    %c0_i32_0 = arith.constant 0 : i32
    %c0_i32_1 = arith.constant 0 : i32
    return %c0_i32, %c0_i32_0 : i32, i32
  }
  func.func @transform_6(%arg0: i32) -> (i32, i32) {
    %c0_i32 = arith.constant 0 : i32
    %c0_i32_0 = arith.constant 0 : i32
    %c0_i32_1 = arith.constant 0 : i32
    return %c0_i32, %c0_i32_0 : i32, i32
  }
  func.func @transform_7(%arg0: i32) -> i32 {
    %c0_i32 = arith.constant 0 : i32
    %c0_i32_0 = arith.constant 0 : i32
    return %c0_i32 : i32
  }
  func.func @transform_8(%arg0: i32) -> (i32, i32) {
    %c0_i32 = arith.constant 0 : i32
    %c0_i32_0 = arith.constant 0 : i32
    return %arg0, %c0_i32 : i32, i32
  }
}

</mosaic_0001>

<bundles_post_ra>
// kernel: tpu_custom_call.1
= control target key start
LH: loop header
LB: loop body
LE: loop exit
PB: predicated region body
PF: predicated region fallthrough
CT: control target
= control target key end

     0   :  { %vm32_vm0 = vcmask 261120   ;;  %v274_v4 = vmov 32.0   ;;  %vm143_vm8 = vcmask 138240   ;;  %vm168_vm9 = vcmask 1041409   ;;  %s376_s0 = inlined_call_operand.vmem [shape: f32[2,8,32], index: 0, kind: input, shape index: {}]   ;;  %s377_s1 = inlined_call_operand.vmem [shape: f32[1,32], index: 1, kind: input, shape index: {}]   ;;  %s378_s2 = inlined_call_operand.vmem [shape: f32[1,32], index: 2, kind: input, shape index: {}]   ;;  %s379_s4 = inlined_call_operand.vmem [shape: f32[1,17], index: 4, kind: input, shape index: {}]   ;;  %s380_s6 = inlined_call_operand.vmem [shape: f32[1,17], index: 6, kind: input, shape index: {}]   ;;  %s381_s3 = inlined_call_operand.vmem [shape: f32[32,17], index: 3, kind: input, shape index: {}]   ;;  %s382_s5 = inlined_call_operand.vmem [shape: f32[1,17], index: 5, kind: input, shape index: {}]   ;;  %s383_s7 = inlined_call_operand.<no memory space> [shape: f32[1], index: 7, kind: input, shape index: {}]   ;;  %s384_s8 = inlined_call_operand.vmem [shape: f32[2,1], index: 8, kind: output, shape index: {}]  }
   0x1   :  { %v30_v0 = vld [vmem:[%s376_s0] sm:$0xff]  ;;  %v31_v2 = vld [vmem:[%s376_s0 + $0x8] sm:$0xff]  ;;  %258 = vrcp.f32 %v274_v4  ;;  %v99_v21 = vld [vmem:[%s381_s3 + $0x18] sm:$0xff]  ;;  %vm171_vm10 = vcmask 58368   ;;  %vm236_vm15 = vcmask 1024  }
   0x2   :  { %v33_v1 = vsel %vm32_vm0, %v30_v0, 0.0  ;;  %v36_v3 = vsel %vm32_vm0, %v31_v2, 0.0  ;;  %118 = vmatpush.msra.mxu0 %v99_v21  ;;  %244 = vmatpush.msra.mxu1 %v99_v21  ;;  %v98_v22 = vld [vmem:[%s381_s3 + $0x10] sm:$0xff]  ;;  %v97_v23 = vld [vmem:[%s381_s3 + $0x8] sm:$0xff]  ;;  %v96_v24 = vld [vmem:[%s381_s3] sm:$0xff] }
   0x3   :  { %34 = vadd.xlane.f32.xlu0 %v33_v1  ;;  %v253_v39 = vld [vmem:[%s377_s1] ss:$0 sm:$0xff] }
   0x4   :  { %119 = vmatpush.msra.mxu0 %v98_v22  ;;  %245 = vmatpush.msra.mxu1 %v98_v22  ;;  %v254_v43 = vld [vmem:[%s378_s2] ss:$0 sm:$0xff] }
   0x5   :  { %v255_v53 = vld [vmem:[%s379_s4] ss:$0 sm:$0xff] }
   0x6   :  { %120 = vmatpush.msra.mxu0 %v97_v23  ;;  %246 = vmatpush.msra.mxu1 %v97_v23  ;;  %v256_v54 = vld [vmem:[%s380_s6] ss:$0 sm:$0xff] }
   0x7   :  { %v259_v5 = vpop.eup %258  ;;  %v257_v59 = vld [vmem:[%s382_s5] ss:$0 sm:$0xff] }
   0x8   :  { %v40_v6 = vmul.f32 32.0, %v259_v5  ;;  %vm44_vm1 = vweird.f32 %v259_v5  ;;  %121 = vmatpush.msra.mxu0 %v96_v24  ;;  %247 = vmatpush.msra.mxu1 %v96_v24 }
   0xa   :  { %v41_v7 = vsub.f32 1.0, %v40_v6 }
   0xb   :  { %37 = vadd.xlane.f32.xlu0 %v36_v3 }
   0xc   :  { %v42_v8 = vmul.f32 %v259_v5, %v41_v7  ;;  %v164_v7 = vlaneseq }
   0xe   :  { %v43_v9 = vadd.f32 %v259_v5, %v42_v8  ;;  %v165_v8 = vand.u32 127, %v164_v7 }
  0x10   :  { %v45_v10 = vsel %vm44_vm1, %v259_v5, %v43_v9 }
  0x76   :  { %v35_v11 = vpop.xlane.xlu0 %34 }
  0x77   :  { %v46_v12 = vmul.f32 %v45_v10, %v35_v11 }
  0x79   :  { %v48_v13 = vsub.f32 %v30_v0, %v46_v12 }
  0x7b   :  { %v50_v14 = vmul.f32 %v48_v13, %v48_v13 }
  0x7d   :  { %v52_v15 = vsel %vm32_vm0, %v50_v14, 0.0  ;;  %v275_v14 = vmov 0  }
  0x7e   :  { %53 = vadd.xlane.f32.xlu1 %v52_v15  ;;  %v38_v16 = vpop.xlane.xlu0 %37  ;;  %250 = vset.pattern.permute.xlu0 %v275_v14 }
  0x7f   :  { %v47_v17 = vmul.f32 %v45_v10, %v38_v16  ;;  %251 = vset.pattern.permute.xlu1 %v275_v14  ;;  %252 = vset.pattern.permute.xlu2 %v275_v14 }
  0x81   :  { %v49_v18 = vsub.f32 %v31_v2, %v47_v17 }
  0x83   :  { %v51_v19 = vmul.f32 %v49_v18, %v49_v18 }
  0x85   :  { %v55_v20 = vsel %vm32_vm0, %v51_v19, 0.0 }
  0x86   :  { %56 = vadd.xlane.f32.xlu1 %v55_v20 }
  0xf1   :  { %v54_v25 = vpop.xlane.xlu1 %53 }
  0xf2   :  { %v58_v26 = vmul.f32 %v54_v25, %v45_v10 }
  0xf4   :  { %v60_v27 = vadd.f32 1e-05, %v58_v26 }
  0xf6   :  { %260 = vrsqrt.f32 %v60_v27  ;;  %vm68_vm3 = vweird.f32 %v60_v27 }
  0xf9   :  { %v57_v28 = vpop.xlane.xlu1 %56 }
  0xfa   :  { %v59_v29 = vmul.f32 %v57_v28, %v45_v10 }
  0xfc   :  { %v261_v30 = vpop.eup %260  ;;  %v61_v31 = vadd.f32 1e-05, %v59_v29 }
  0xfd   :  { %v63_v32 = vmul.f32 %v261_v30, %v60_v27  ;;  %vm69_vm2 = vweird.f32 %v261_v30 }
  0xfe   :  { %262 = vrsqrt.f32 %v61_v31  ;;  %vm70_vm4 = vmor %vm68_vm3, %vm69_vm2  ;;  %vm78_vm6 = vweird.f32 %v61_v31 }
  0xff   :  { %v64_v33 = vmul.f32 %v261_v30, %v63_v32 }
 0x101   :  { %v65_v34 = vmul.f32 0.5, %v64_v33 }
 0x103   :  { %v66_v35 = vsub.f32 1.5, %v65_v34 }
 0x104   :  { %v263_v36 = vpop.eup %262 }
 0x105   :  { %v67_v37 = vmul.f32 %v261_v30, %v66_v35  ;;  %v73_v38 = vmul.f32 %v263_v36, %v61_v31  ;;  %vm79_vm5 = vweird.f32 %v263_v36 }
 0x106   :  { %vm80_vm7 = vmor %vm78_vm6, %vm79_vm5 }
 0x107   :  { %v71_v40 = vsel %vm70_vm4, %v261_v30, %v67_v37  ;;  %v74_v41 = vmul.f32 %v263_v36, %v73_v38 }
 0x108   :  { %v82_v42 = vmul.f32 %v71_v40, %v48_v13 }
 0x109   :  { %v75_v44 = vmul.f32 0.5, %v74_v41 }
 0x10a   :  { %v88_v45 = vmul.f32 %v253_v39, %v82_v42 }
 0x10b   :  { %v76_v46 = vsub.f32 1.5, %v75_v44 }
 0x10c   :  { %v94_v47 = vadd.f32 %v254_v43, %v88_v45 }
 0x10d   :  { %v77_v48 = vmul.f32 %v263_v36, %v76_v46 }
 0x10e   :  { %242 = vmatmul.msk.f32.vlgmr.msra.gmra.mxu0 %vm32_vm0, %v94_v47 }
 0x10f   :  { %v81_v49 = vsel %vm80_vm7, %v263_v36, %v77_v48 }
 0x110   :  { %v83_v50 = vmul.f32 %v81_v49, %v49_v18 }
 0x112   :  { %v89_v51 = vmul.f32 %v253_v39, %v83_v50 }
 0x114   :  { %v95_v52 = vadd.f32 %v254_v43, %v89_v51  ;;  %v234_v51 = vstv %s383_s7 }
 0x116   :  { %243 = vmatmul.msk.f32.vlgmr.msra.gmra.mxu1 %vm32_vm0, %v95_v52 }
 0x18b   :  { %v123_v55 = vpop.f32.mrf.mxu0 }
 0x18c   :  { %v133_v56 = vadd.f32 %v255_v53, %v123_v55  ;;  %v154_v57 = vmul.f32 %v256_v54, %v123_v55 }
 0x18e   :  { %264 = vtanh.f32 %v133_v56  ;;  %v156_v58 = vsel %vm143_vm8, %v154_v57, 0.0 }
 0x18f   :  { %157 = vadd.xlane.f32.xlu1 %v156_v58 }
 0x193   :  { %v126_v60 = vpop.f32.mrf.mxu1 }
 0x194   :  { %v265_v61 = vpop.eup %264  ;;  %v134_v62 = vadd.f32 %v255_v53, %v126_v60  ;;  %v155_v4 = vmul.f32 %v256_v54, %v126_v60 }
 0x195   :  { %v141_v63 = vmul.f32 %v265_v61, %v257_v59 }
 0x196   :  { %266 = vtanh.f32 %v134_v62  ;;  %v159_v5 = vsel %vm143_vm8, %v155_v4, 0.0 }
 0x197   :  { %v144_v0 = vsel %vm143_vm8, %v141_v63, 0.0 }
 0x198   :  { %145 = vadd.xlane.f32.xlu2 %v144_v0 }
 0x19c   :  { %v267_v1 = vpop.eup %266 }
 0x19d   :  { %v142_v2 = vmul.f32 %v267_v1, %v257_v59 }
 0x19f   :  { %v147_v3 = vsel %vm143_vm8, %v142_v2, 0.0 }
 0x1a0   :  { %148 = vadd.xlane.f32.xlu2 %v147_v3 }
 0x1a8   :  { %160 = vadd.xlane.f32.xlu2 %v159_v5 }
 0x202   :  { %v158_v23 = vpop.xlane.xlu1 %157 }
 0x20b   :  { %v146_v6 = vpop.xlane.xlu2 %145 }
 0x20c   :  { %v166_v10 = vperm.slane %v146_v6, %v165_v8 }
 0x213   :  { %v149_v9 = vpop.xlane.xlu2 %148 }
 0x214   :  { %v167_v11 = vperm.slane %v149_v9, %v165_v8 }
 0x216   :  { %v169_v12 = vsel %vm168_vm9, %v167_v11, %v166_v10 }
 0x217   :  { %v172_v13 = vsel %vm171_vm10, %v169_v12, -inf }
 0x218   :  { %173 = vmax.xlane.f32.xlu0 %v172_v13 }
 0x21b   :  { %v161_v26 = vpop.xlane.xlu2 %160 }
 0x28b   :  { %v174_v15 = vpop.xlane.xlu0 %173 }
 0x28c   :  { %v176_v16 = vperm.slane %v174_v15, 0  ;;  %v177_v17 = vperm.slane %v174_v15, 1 }
 0x28e   :  { %v180_v18 = vsub.f32 %v146_v6, %v176_v16  ;;  %v181_v19 = vsub.f32 %v149_v9, %v177_v17 }
 0x290   :  { %v182_v20 = vmul.f32 1.442695, %v180_v18  ;;  %v184_v21 = vmul.f32 1.442695, %v181_v19 }
 0x292   :  { %268 = vpow2.f32 %v182_v20 }
 0x293   :  { %270 = vpow2.f32 %v184_v21 }
 0x298   :  { %v269_v22 = vpop.eup %268 }
 0x299   :  { %v271_v24 = vpop.eup %270  ;;  %189 = vperm.xlu0 %250, %v269_v22   ;;  %v201_v25 = vmul.f32 %v269_v22, %v158_v23 }
 0x29a   :  { %192 = vperm.xlu1 %251, %v271_v24   ;;  %v202_v27 = vmul.f32 %v271_v24, %v161_v26 }
 0x29b   :  { %206 = vperm.xlu2 %252, %v201_v25  }
 0x2a3   :  { %209 = vperm.xlu2 %252, %v202_v27  }
 0x2f5   :  { %v207_v28 = vpop.permute.xlu2 %206 }
 0x2f6   :  { %v211_v30 = vperm.slane %v207_v28, %v165_v8 }
 0x2fd   :  { %v210_v29 = vpop.permute.xlu2 %209 }
 0x2fe   :  { %v212_v31 = vperm.slane %v210_v29, %v165_v8 }
 0x300   :  { %v213_v32 = vsel %vm168_vm9, %v212_v31, %v211_v30 }
 0x301   :  { %v215_v33 = vsel %vm171_vm10, %v213_v32, 0.0 }
 0x302   :  { %216 = vadd.xlane.f32.xlu2 %v215_v33 }
 0x30b   :  { %v190_v34 = vpop.permute.xlu0 %189 }
 0x30c   :  { %v194_v35 = vperm.slane %v190_v34, %v165_v8  ;;  %v193_v36 = vpop.permute.xlu1 %192 }
 0x30d   :  { %v195_v37 = vperm.slane %v193_v36, %v165_v8 }
 0x30f   :  { %v196_v38 = vsel %vm168_vm9, %v195_v37, %v194_v35 }
 0x310   :  { %v198_v39 = vsel %vm171_vm10, %v196_v38, 0.0 }
 0x311   :  { %199 = vadd.xlane.f32.xlu1 %v198_v39 }
 0x375   :  { %v217_v50 = vpop.xlane.xlu2 %216 }
 0x384   :  { %v200_v40 = vpop.xlane.xlu1 %199 }
 0x385   :  { %272 = vrcp.f32 %v200_v40  ;;  %v229_v44 = vand.u32 2147483648, %v200_v40  ;;  %v227_v46 = vand.u32 2147483647, %v200_v40  ;;  %vm223_vm12 = vweird.f32 %v200_v40 }
 0x387   :  { %v230_v48 = vor.u32 1.1754944e-38, %v229_v44  ;;  %vm228_vm14 = vcmp.eq.f32.partialorder %v227_v46, 8.507059e+37 }
 0x38b   :  { %v273_v41 = vpop.eup %272 }
 0x38c   :  { %v219_v42 = vmul.f32 %v273_v41, %v200_v40  ;;  %vm224_vm11 = vweird.f32 %v273_v41 }
 0x38d   :  { %vm225_vm13 = vmor %vm223_vm12, %vm224_vm11 }
 0x38e   :  { %v220_v43 = vsub.f32 1.0, %v219_v42 }
 0x390   :  { %v221_v45 = vmul.f32 %v273_v41, %v220_v43 }
 0x392   :  { %v222_v47 = vadd.f32 %v273_v41, %v221_v45 }
 0x394   :  { %v226_v49 = vsel %vm225_vm13, %v273_v41, %v222_v47 }
 0x395   :  { %v231_v52 = vsel %vm228_vm14, %v230_v48, %v226_v49 }
 0x396   :  { %v232_v53 = vmul.f32 %v231_v52, %v217_v50 }
 0x398   :  { %v235_v54 = vadd.f32 %v234_v51, %v232_v53 }
 0x39a   :  { %237 = vst.msk [vmem:[%s384_s8] sm:$0x3] %vm236_vm15, %v235_v54 }

</bundles_post_ra>
